<compile_context>
chip_gen: v7x
topology: tpu7x:2x2x1
jax: 0.10.0
libtpu: 0.0.40
codegen_flags: <defaults>
</compile_context>

<pallas_src>
import numpy as np
import jax
import jax.numpy as jnp
from jax.experimental import pallas as pl
from jax.experimental.pallas import tpu as pltpu

LN_EPS = 1e-5  # torch.nn.LayerNorm default eps


def spect_block_kernel(x_ref, tt_ref, gamma_ref, bias_ref, out_ref):
    """One batch element per grid step, all layers inside.

    x_ref:     (1, M, P, N)   input, seq_len on the lane axis
    tt_ref:    (L, A, N)      fused (rfft @ W @ irfft)^T per layer (resident)
    gamma_ref: (L, 1, M*P)    LayerNorm gamma repeated along P (resident)
    bias_ref:  (L, A, M*P)    LayerNorm beta folded through the transform
    out_ref:   (L, 1, A, M*P) lane-dense output slab
    """
    x = x_ref[0]                                    # (M, P, N) f32
    m, p, n = x.shape

    # ---- LayerNorm over in_feat (axis 0): single-pass biased stats (torch) ----
    mu = jnp.mean(x, axis=0, keepdims=True)         # (1, P, N)
    ms = jnp.mean(x * x, axis=0, keepdims=True)     # (1, P, N)
    var = jnp.maximum(ms - mu * mu, 0.0)            # clamp: no NaN from padding
    xhat = (x - mu) * jax.lax.rsqrt(var + LN_EPS)   # (M, P, N)

    # ---- one transpose, hoisted out of the layer loop --------------------------
    # (M, P, N) -> (M*P, N) -> (N, M*P): seq_len becomes the contraction (K) dim,
    # M*P becomes the MXU-width / lane dim of the result.
    xh_t = xhat.reshape(m * p, n).T                 # (N, M*P)

    # ---- per layer: ONE lane-dense 2-D MXU matmul + folded affine --------------
    num_layers = tt_ref.shape[0]
    for l in range(num_layers):                     # static unroll, L is small
        res = jnp.dot(tt_ref[l], xh_t,
                      preferred_element_type=jnp.float32)     # (A, M*P)
        out_ref[l, 0] = res * gamma_ref[l] + bias_ref[l]

    # TODO(synk): nn.Dropout(0.1) is identity in eval mode; training-mode RNG
    # masking (pltpu.prng_seed / prng_random_bits) is not implemented here.


def make_basis_matrices(seq_len, adapter_len):
    """Real DFT (rfft) and inverse real-DFT (irfft, n=adapter_len) bases."""
    N = seq_len
    F = N // 2 + 1
    A = adapter_len
    d2 = A // 2  # number of frequency bins produced by the adapter weights

    n = np.arange(N)[:, None].astype(np.float64)
    k = np.arange(F)[None, :].astype(np.float64)
    ccos = np.cos(2.0 * np.pi * k * n / N)             # Re(rfft) basis  (N, F)
    csin = -np.sin(2.0 * np.pi * k * n / N)            # Im(rfft) basis  (N, F)

    j = np.arange(d2)[:, None].astype(np.float64)
    t = np.arange(A)[None, :].astype(np.float64)
    # irfft with n=A: input is zero-padded to A//2+1 bins; imag of DC ignored.
    scale = np.where(j == 0, 1.0, 2.0) / A
    br = scale * np.cos(2.0 * np.pi * j * t / A)        # (d2, A)
    bi = -(2.0 / A) * np.sin(2.0 * np.pi * j * t / A)   # (d2, A)
    bi[0, :] = 0.0                                      # Im of DC bin is ignored

    f32 = lambda a: jnp.asarray(a, dtype=jnp.float32)
    return f32(ccos), f32(csin), f32(br), f32(bi)


def fft_adapter_pallas(x, params, adapter_len):
    """FFT_adapter forward. x: (B, in_feat, seq_len, P). Returns list of
    per-layer outputs, each (B, in_feat, adapter_len, P)."""
    B, M, N, P = x.shape
    A = adapter_len
    L = len(params)
    C = M * P
    ccos, csin, br, bi = make_basis_matrices(N, A)

    # Per-layer fused transform + folded affine terms (tiny XLA matmuls, once).
    tt_l, gamma_l, bias_l = [], [], []
    for prm in params:
        T = ccos @ prm["wr"] @ br + csin @ prm["wi"] @ bi     # (N, A)
        tt_l.append(T.T)                                      # (A, N)
        # gamma/beta act per in_feat m; flattened column index is c = m*P + p.
        gamma_l.append(jnp.repeat(prm["gamma"].astype(jnp.float32), P).reshape(1, C))
        colsum = jnp.sum(T, axis=0).reshape(A, 1)             # (A, 1)
        beta_rep = jnp.repeat(prm["beta"].astype(jnp.float32), P).reshape(1, C)
        bias_l.append(colsum * beta_rep)                      # (A, C)

    tt_all = jnp.stack(tt_l).astype(jnp.float32)              # (L, A, N)
    gamma_all = jnp.stack(gamma_l).astype(jnp.float32)        # (L, 1, C)
    bias_all = jnp.stack(bias_l).astype(jnp.float32)          # (L, A, C)

    # One streaming HBM transpose so seq_len sits on the lane axis in-kernel.
    x_t = jnp.transpose(x.astype(jnp.float32), (0, 1, 3, 2))  # (B, M, P, N)

    out = pl.pallas_call(
        spect_block_kernel,
        out_shape=jax.ShapeDtypeStruct((L, B, A, C), jnp.float32),
        grid=(B,),
        in_specs=[
            pl.BlockSpec((1, M, P, N), lambda b: (b, 0, 0, 0)),   # x, one batch/step
            pl.BlockSpec((L, A, N),    lambda b: (0, 0, 0)),      # T^T, resident
            pl.BlockSpec((L, 1, C),    lambda b: (0, 0, 0)),      # gamma, resident
            pl.BlockSpec((L, A, C),    lambda b: (0, 0, 0)),      # bias, resident
        ],
        out_specs=pl.BlockSpec((L, 1, A, C), lambda b: (0, b, 0, 0)),
        compiler_params=pltpu.CompilerParams(
            dimension_semantics=("parallel",),        # megacore sharding on v7x
            vmem_limit_bytes=32 * 1024 * 1024),       # safe on v5e/v6e/v7x
    )(x_t, tt_all, gamma_all, bias_all)

    # Cheap wrapper-side unflatten of the lane-dense kernel output.
    out = jnp.transpose(out.reshape(L, B, A, M, P), (0, 1, 3, 2, 4))  # (L,B,M,A,P)
    return [out[i] for i in range(L)]


# ---------------------- pure-JAX reference (for checking) ----------------------
def spect_block_ref(x, gamma, beta, wr, wi, adapter_len):
    B, M, N, P = x.shape
    xp = jnp.transpose(x, (0, 2, 3, 1))                 # (B, N, P, M)
    mu = jnp.mean(xp, axis=-1, keepdims=True)
    var = jnp.mean((xp - mu) ** 2, axis=-1, keepdims=True)
    xn = (xp - mu) / jnp.sqrt(var + LN_EPS) * gamma + beta
    xn = jnp.transpose(xn, (0, 3, 1, 2))                # (B, M, N, P)
    xt = jnp.transpose(xn, (0, 1, 3, 2))                # (B, M, P, N)
    xft = jnp.fft.rfft(xt, axis=-1)
    xr = jnp.einsum("bmpn,nd->bmpd", jnp.real(xft), wr)
    xi = jnp.einsum("bmpn,nd->bmpd", jnp.imag(xft), wi)
    res = jnp.fft.irfft(xr + 1j * xi, n=adapter_len, axis=-1)  # (B, M, P, A)
    return jnp.transpose(res, (0, 1, 3, 2))             # (B, M, A, P)


if __name__ == "__main__":
    # Small shapes consistent with FFT_adapter(n_layer, in_feat, seq_len):
    # x: (B, in_feat, seq_len, P)
    B, in_feat, seq_len, P = 2, 8, 16, 4
    n_layer = 2
    adapter_len = 8
    freq_len = seq_len // 2 + 1

    key = jax.random.PRNGKey(0)
    key, kx = jax.random.split(key)
    x = jax.random.normal(kx, (B, in_feat, seq_len, P), dtype=jnp.float32)

    params = []
    for _ in range(n_layer):
        key, k1, k2, k3, k4 = jax.random.split(key, 5)
        params.append(dict(
            # LayerNorm affine (init is ones/zeros; use deterministic jitter so
            # the affine path is actually exercised)
            gamma=(1.0 + 0.1 * jax.random.normal(k1, (in_feat,))).astype(jnp.float32),
            beta=(0.1 * jax.random.normal(k2, (in_feat,))).astype(jnp.float32),
            # SpectModule weights: torch.rand -> uniform [0, 1)
            wr=jax.random.uniform(k3, (freq_len, adapter_len // 2), dtype=jnp.float32),
            wi=jax.random.uniform(k4, (freq_len, adapter_len // 2), dtype=jnp.float32),
        ))

    outs = fft_adapter_pallas(x, params, adapter_len)
    outs = [jax.block_until_ready(o) for o in outs]

    # correctness check vs. pure-JAX (fft-based) reference
    for o, p in zip(outs, params):
        ref = spect_block_ref(x, p["gamma"], p["beta"], p["wr"], p["wi"], adapter_len)
        np.testing.assert_allclose(np.asarray(o), np.asarray(ref),
                                   rtol=2e-3, atol=2e-3)
        assert o.shape == (B, in_feat, adapter_len, P)

    print("KERNEL_OK")
</pallas_src>

<mosaic_0001>
module attributes {stable_mosaic.version = 11 : i64} {
  func.func @spect_block_kernel(%arg0: i32, %arg1: memref<1x8x4x16xf32, #tpu.memory_space<vmem>>, %arg2: memref<2x8x16xf32, #tpu.memory_space<vmem>>, %arg3: memref<2x1x32xf32, #tpu.memory_space<vmem>>, %arg4: memref<2x8x32xf32, #tpu.memory_space<vmem>>, %arg5: memref<2x1x8x32xf32, #tpu.memory_space<vmem>>) attributes {dimension_semantics = [#tpu.dimension_semantics<parallel>], iteration_bounds = array<i64: 2>, scalar_prefetch = 0 : i64, scratch_operands = 0 : i64, tpu.core_type = #tpu.core_type<tc>, window_params = [{transform_indices = @transform_0, window_bounds = array<i64: 1, 8, 4, 16>}, {pipeline_mode = #tpu.pipeline_mode<synchronous>, transform_indices = @transform_1, window_bounds = array<i64: 2, 8, 16>}, {pipeline_mode = #tpu.pipeline_mode<synchronous>, transform_indices = @transform_2, window_bounds = array<i64: 2, 1, 32>}, {pipeline_mode = #tpu.pipeline_mode<synchronous>, transform_indices = @transform_3, window_bounds = array<i64: 2, 8, 32>}, {transform_indices = @transform_4, window_bounds = array<i64: 2, 1, 8, 32>}]} {
    %c0 = arith.constant 0 : index
    %c0_0 = arith.constant 0 : index
    %c0_1 = arith.constant 0 : index
    %c0_2 = arith.constant 0 : index
    %0 = vector.load %arg1[%c0, %c0_0, %c0_1, %c0_2] : memref<1x8x4x16xf32, #tpu.memory_space<vmem>>, vector<1x8x4x16xf32>
    %1 = vector.shape_cast %0 : vector<1x8x4x16xf32> to vector<8x4x16xf32>
    %cst = arith.constant dense<0.000000e+00> : vector<4x16xf32>
    %2 = vector.multi_reduction <add>, %1, %cst [0] : vector<8x4x16xf32> to vector<4x16xf32>
    %3 = vector.shape_cast %2 : vector<4x16xf32> to vector<1x4x16xf32>
    %cst_3 = arith.constant 8.000000e+00 : f32
    %4 = vector.broadcast %cst_3 : f32 to vector<1x4x16xf32>
    %5 = arith.divf %3, %4 : vector<1x4x16xf32>
    %6 = arith.mulf %1, %1 : vector<8x4x16xf32>
    %cst_4 = arith.constant dense<0.000000e+00> : vector<4x16xf32>
    %7 = vector.multi_reduction <add>, %6, %cst_4 [0] : vector<8x4x16xf32> to vector<4x16xf32>
    %8 = vector.shape_cast %7 : vector<4x16xf32> to vector<1x4x16xf32>
    %cst_5 = arith.constant 8.000000e+00 : f32
    %9 = vector.broadcast %cst_5 : f32 to vector<1x4x16xf32>
    %10 = arith.divf %8, %9 : vector<1x4x16xf32>
    %11 = arith.mulf %5, %5 : vector<1x4x16xf32>
    %12 = arith.subf %10, %11 : vector<1x4x16xf32>
    %cst_6 = arith.constant 0.000000e+00 : f32
    %13 = vector.broadcast %cst_6 : f32 to vector<1x4x16xf32>
    %14 = arith.maximumf %12, %13 : vector<1x4x16xf32>
    %15 = vector.broadcast %5 : vector<1x4x16xf32> to vector<8x4x16xf32>
    %16 = arith.subf %1, %15 : vector<8x4x16xf32>
    %cst_7 = arith.constant 9.99999974E-6 : f32
    %17 = vector.broadcast %cst_7 : f32 to vector<1x4x16xf32>
    %18 = arith.addf %14, %17 : vector<1x4x16xf32>
    %19 = math.rsqrt %18 : vector<1x4x16xf32>
    %20 = vector.broadcast %19 : vector<1x4x16xf32> to vector<8x4x16xf32>
    %21 = arith.mulf %16, %20 : vector<8x4x16xf32>
    %22 = vector.shape_cast %21 : vector<8x4x16xf32> to vector<32x16xf32>
    %23 = tpu.transpose %22, [1, 0] : vector<32x16xf32> -> vector<16x32xf32>
    %c0_8 = arith.constant 0 : index
    %c0_9 = arith.constant 0 : index
    %c0_10 = arith.constant 0 : index
    %24 = vector.load %arg2[%c0_8, %c0_9, %c0_10] : memref<2x8x16xf32, #tpu.memory_space<vmem>>, vector<1x8x16xf32>
    %25 = vector.shape_cast %24 : vector<1x8x16xf32> to vector<8x16xf32>
    %cst_11 = arith.constant dense<0.000000e+00> : vector<8x32xf32>
    %26 = tpu.matmul %25, %23, %cst_11 {dimension_numbers = #tpu.dot_dimension_numbers<[1], [0], [0], [1], [0, 0, 1, 1], [], []>} : vector<8x16xf32>, vector<16x32xf32>, vector<8x32xf32> -> vector<8x32xf32>
    %c0_12 = arith.constant 0 : index
    %c0_13 = arith.constant 0 : index
    %c0_14 = arith.constant 0 : index
    %27 = vector.load %arg3[%c0_12, %c0_13, %c0_14] : memref<2x1x32xf32, #tpu.memory_space<vmem>>, vector<1x1x32xf32>
    %28 = vector.shape_cast %27 : vector<1x1x32xf32> to vector<1x32xf32>
    %29 = vector.broadcast %28 : vector<1x32xf32> to vector<8x32xf32>
    %30 = arith.mulf %26, %29 : vector<8x32xf32>
    %c0_15 = arith.constant 0 : index
    %c0_16 = arith.constant 0 : index
    %c0_17 = arith.constant 0 : index
    %31 = vector.load %arg4[%c0_15, %c0_16, %c0_17] : memref<2x8x32xf32, #tpu.memory_space<vmem>>, vector<1x8x32xf32>
    %32 = vector.shape_cast %31 : vector<1x8x32xf32> to vector<8x32xf32>
    %33 = arith.addf %30, %32 : vector<8x32xf32>
    %c0_18 = arith.constant 0 : index
    %c0_19 = arith.constant 0 : index
    %c0_20 = arith.constant 0 : index
    %c0_21 = arith.constant 0 : index
    %34 = vector.load %arg5[%c0_18, %c0_19, %c0_20, %c0_21] : memref<2x1x8x32xf32, #tpu.memory_space<vmem>>, vector<1x1x8x32xf32>
    %35 = vector.shape_cast %34 : vector<1x1x8x32xf32> to vector<8x32xf32>
    %36 = vector.shape_cast %33 : vector<8x32xf32> to vector<1x1x8x32xf32>
    tpu.vector_store %arg5[%c0_18, %c0_19, %c0_20, %c0_21], %36 {strides = array<i32>} : memref<2x1x8x32xf32, #tpu.memory_space<vmem>>, vector<1x1x8x32xf32>,
    %c1 = arith.constant 1 : index
    %c0_22 = arith.constant 0 : index
    %c0_23 = arith.constant 0 : index
    %37 = vector.load %arg2[%c1, %c0_22, %c0_23] : memref<2x8x16xf32, #tpu.memory_space<vmem>>, vector<1x8x16xf32>
    %38 = vector.shape_cast %37 : vector<1x8x16xf32> to vector<8x16xf32>
    %cst_24 = arith.constant dense<0.000000e+00> : vector<8x32xf32>
    %39 = tpu.matmul %38, %23, %cst_24 {dimension_numbers = #tpu.dot_dimension_numbers<[1], [0], [0], [1], [0, 0, 1, 1], [], []>} : vector<8x16xf32>, vector<16x32xf32>, vector<8x32xf32> -> vector<8x32xf32>
    %c1_25 = arith.constant 1 : index
    %c0_26 = arith.constant 0 : index
    %c0_27 = arith.constant 0 : index
    %40 = vector.load %arg3[%c1_25, %c0_26, %c0_27] : memref<2x1x32xf32, #tpu.memory_space<vmem>>, vector<1x1x32xf32>
    %41 = vector.shape_cast %40 : vector<1x1x32xf32> to vector<1x32xf32>
    %42 = vector.broadcast %41 : vector<1x32xf32> to vector<8x32xf32>
    %43 = arith.mulf %39, %42 : vector<8x32xf32>
    %c1_28 = arith.constant 1 : index
    %c0_29 = arith.constant 0 : index
    %c0_30 = arith.constant 0 : index
    %44 = vector.load %arg4[%c1_28, %c0_29, %c0_30] : memref<2x8x32xf32, #tpu.memory_space<vmem>>, vector<1x8x32xf32>
    %45 = vector.shape_cast %44 : vector<1x8x32xf32> to vector<8x32xf32>
    %46 = arith.addf %43, %45 : vector<8x32xf32>
    %c1_31 = arith.constant 1 : index
    %c0_32 = arith.constant 0 : index
    %c0_33 = arith.constant 0 : index
    %c0_34 = arith.constant 0 : index
    %47 = vector.load %arg5[%c1_31, %c0_32, %c0_33, %c0_34] : memref<2x1x8x32xf32, #tpu.memory_space<vmem>>, vector<1x1x8x32xf32>
    %48 = vector.shape_cast %47 : vector<1x1x8x32xf32> to vector<8x32xf32>
    %49 = vector.shape_cast %46 : vector<8x32xf32> to vector<1x1x8x32xf32>
    tpu.vector_store %arg5[%c1_31, %c0_32, %c0_33, %c0_34], %49 {strides = array<i32>} : memref<2x1x8x32xf32, #tpu.memory_space<vmem>>, vector<1x1x8x32xf32>,
    return
  }
  func.func @transform_0(%arg0: i32) -> (i32, i32, i32, i32) {
    %c0_i32 = arith.constant 0 : i32
    %c0_i32_0 = arith.constant 0 : i32
    %c0_i32_1 = arith.constant 0 : i32
    %c0_i32_2 = arith.constant 0 : i32
    return %arg0, %c0_i32, %c0_i32_0, %c0_i32_1 : i32, i32, i32, i32
  }
  func.func @transform_1(%arg0: i32) -> (i32, i32, i32) {
    %c0_i32 = arith.constant 0 : i32
    %c0_i32_0 = arith.constant 0 : i32
    %c0_i32_1 = arith.constant 0 : i32
    %c0_i32_2 = arith.constant 0 : i32
    return %c0_i32, %c0_i32_0, %c0_i32_1 : i32, i32, i32
  }
  func.func @transform_2(%arg0: i32) -> (i32, i32, i32) {
    %c0_i32 = arith.constant 0 : i32
    %c0_i32_0 = arith.constant 0 : i32
    %c0_i32_1 = arith.constant 0 : i32
    %c0_i32_2 = arith.constant 0 : i32
    return %c0_i32, %c0_i32_0, %c0_i32_1 : i32, i32, i32
  }
  func.func @transform_3(%arg0: i32) -> (i32, i32, i32) {
    %c0_i32 = arith.constant 0 : i32
    %c0_i32_0 = arith.constant 0 : i32
    %c0_i32_1 = arith.constant 0 : i32
    %c0_i32_2 = arith.constant 0 : i32
    return %c0_i32, %c0_i32_0, %c0_i32_1 : i32, i32, i32
  }
  func.func @transform_4(%arg0: i32) -> (i32, i32, i32, i32) {
    %c0_i32 = arith.constant 0 : i32
    %c0_i32_0 = arith.constant 0 : i32
    %c0_i32_1 = arith.constant 0 : i32
    %c0_i32_2 = arith.constant 0 : i32
    return %c0_i32, %arg0, %c0_i32_0, %c0_i32_1 : i32, i32, i32, i32
  }
}

</mosaic_0001>

<bundles_post_ra>
// kernel: tpu_custom_call.1
= control target key start
LH: loop header
LB: loop body
LE: loop exit
PB: predicated region body
PF: predicated region fallthrough
CT: control target
= control target key end

     0   :  { %9 = vsyncpa [#allocation3], 0  ;;  %s1272_s0 = inlined_call_operand.hbm [shape: f32[2,8,4,16], index: 0, kind: input, shape index: {}]   ;;  %s1273_s1 = inlined_call_operand.hbm [shape: f32[2,8,16], index: 1, kind: input, shape index: {}]   ;;  %s1274_s2 = inlined_call_operand.vmem [shape: f32[2,1,32], index: 2, kind: input, shape index: {}]   ;;  %s1275_s3 = inlined_call_operand.hbm [shape: f32[2,8,32], index: 3, kind: input, shape index: {}]   ;;  %s1276_s4 = inlined_call_operand.hbm [shape: f32[2,2,8,32], index: 4, kind: output, shape index: {}]  }
   0x1   :  { %11 = vsyncpa [#allocation3 + $0x1], 0 }
   0x2   :  { %12 = vsyncpa [#allocation6], 0 }
   0x3   :  { %13 = vsyncpa [#allocation4], 0 }
   0x4   :  { %15 = vsyncpa [#allocation4 + $0x1], 0  ;;  %s973_s15 = smov 0   ;;  %s975_s16 = smov 0  }
   0x5   :  { %s977_s17 = smov 0   ;;  %s979_s18 = smov 0  }
   0x6 LB: > { %s994_s19 = sadd.s32 4294967295, %s932_s18   ;;  %s617_s20 = sadd.s32 4294967294, %s932_s18   ;;  %s932_s18 = sphi %s979_s18, %s1296_s18   ;;  %s928_s17 = sphi %s977_s17, %s1295_s17   ;;  %s924_s16 = sphi %s975_s16, %s1294_s16   ;;  %s920_s15 = sphi %s973_s15, %s1293_s15  }
   0x7   : > { %p41_p0 = scmp.ne.s32.totalorder %s924_s16, %s920_s15  ;;  %p1277_p1 = scmp.eq.s32.totalorder %s994_s19, 0 }
   0x8   : > { %p134_p3 = scmp.eq.s32.totalorder %s617_s20, 1  ;;  %p618_p5 = scmp.ge.s32.totalorder %s932_s18, 1 }
   0x9   : > { %p1003_p4 = por %p1277_p1, %p41_p0  ;;  %p141_p7 = scmp.lt.s32.totalorder %s932_s18, 3 }
   0xa   : > { %p1008_p6 = por %p134_p3, %p41_p0  ;;  %s934_s24 = smov [#allocation5]  }
   0xb   : > { %s1280_s21 = scalar_select %p1003_p4, 1, 0 }
   0xc   : > { %s1281_s22 = scalar_select %p1008_p6, 1, 0 }
   0xd   : > { %p1013_p8 = pnand %p618_p5, %p141_p7  ;;  %s153_s25 = sshll.u32 %s934_s24, 4  ;;  %s1017_s25 = int_to_ptr.vmem [resolvable:$true] %s153_s25 }
   0xe   : > { %s935_s27 = smov [#allocation7]   ;;  %s776_s5 = scalar_lea.hbm %s1273_s1, 256 }
   0xf   : > { %p709_p9 = pneg %p1013_p8  ;;  %s169_s28 = sshll.u32 %s935_s27, 4  ;;  %s1028_s28 = int_to_ptr.vmem [resolvable:$true] %s169_s28 }
  0x10   : > { %p777_p12 = scmp.ne.s32.totalorder %s1273_s1, %s776_s5  ;;  %p783_p5 = scmp.lt.u32.totalorder %s776_s5, %s1273_s1 }
  0x11   : > { %p1024_p11 = pnand %p709_p9, %p1277_p1 }
  0x13   : > { %p778_p13 = pneg %p1024_p11 }
  0x15   : > { %p779_p0 = pnand %p778_p13, %p777_p12 }
  0x17   : > { %p780_p3 = pneg %p779_p0 }
  0x19   : > { %p785_p7 = pnand %p783_p5, %p780_p3 }
  0x1b   : > { %788 = shalt.err (!%p785_p7)
}
  0x1c   : > { %s789_s10 = scalar_lea.vmem %s1017_s25, 256  ;;  %p797_p2 = scmp.lt.s32.totalorder %s1017_s25, %s1017_s25 }
  0x1d   : > { %p790_p9 = scmp.ne.s32.totalorder %s1017_s25, %s789_s10  ;;  %p798_p12 = scmp.lt.s32.totalorder %s789_s10, %s789_s10 }
  0x1f   : > { %p792_p10 = pnand %p790_p9, %p778_p13  ;;  %p799_p0 = por %p798_p12, %p797_p2 }
  0x21   : > { %p793_p1 = pneg %p792_p10 }
  0x23   : > { %p800_p6 = pnand %p799_p0, %p793_p1 }
  0x25   : > { %803 = shalt.err (!%p800_p6)
}
  0x26   : > { %s936_s11 = smov 128   ;;  %s937_s12 = smov 8  }
  0x27   : > { %712 = dma.hbm_to_vmem [thread:$0]  (!%p1024_p11), %s1273_s1, 256, %s1017_s25, [#allocation6], %s936_s11, %s936_s11, %s937_s12  }
  0x28   : > { %s804_s27 = scalar_lea.hbm %s1275_s3, 256 }
  0x29   : > { %p805_p2 = scmp.ne.s32.totalorder %s1275_s3, %s804_s27  ;;  %p811_p10 = scmp.lt.u32.totalorder %s804_s27, %s1275_s3 }
  0x2b   : > { %p807_p1 = pnand %p805_p2, %p778_p13 }
  0x2d   : > { %p808_p6 = pneg %p807_p1 }
  0x2f   : > { %p813_p3 = pnand %p811_p10, %p808_p6 }
  0x31   : > { %816 = shalt.err (!%p813_p3)
}
  0x32   : > { %s817_s25 = scalar_lea.vmem %s1028_s28, 256  ;;  %p825_p12 = scmp.lt.s32.totalorder %s1028_s28, %s1028_s28 }
  0x33   : > { %p818_p5 = scmp.ne.s32.totalorder %s1028_s28, %s817_s25  ;;  %p826_p0 = scmp.lt.s32.totalorder %s817_s25, %s817_s25 }
  0x35   : > { %p820_p7 = pnand %p818_p5, %p778_p13  ;;  %p827_p2 = por %p826_p0, %p825_p12 }
  0x37   : > { %p821_p9 = pneg %p820_p7 }
  0x39   : > { %p828_p1 = pnand %p827_p2, %p821_p9 }
  0x3b   : > { %831 = shalt.err (!%p828_p1)
}
  0x3c   : > { %715 = dma.hbm_to_vmem [thread:$0]  (!%p1024_p11), %s1275_s3, 256, %s1028_s28, [#allocation6], %s936_s11, %s936_s11, %s937_s12  }
  0x3d   : > { %s1083_s9 = sadd.s32 1, %s932_s18   ;;  %s28_s26 = sadd.s32 1, %s928_s17 }
  0x3e   : > { %s25_s10 = ssub.s32 %s932_s18, %s1083_s9  ;;  %p35_p13 = scmp.ne.s32.totalorder %s928_s17, %s924_s16 }
  0x3f   : > { %p26_p6 = scmp.eq.s32.totalorder %s25_s10, 0  ;;  %p36_p10 = scmp.eq.s32.totalorder %s932_s18, 0 }
  0x40   : > { %p1284_p3 = scmp.eq.s32.totalorder %s994_s19, 1  ;;  %p726_p7 = scmp.lt.s32.totalorder %s932_s18, 2 }
  0x41   : > { %s1099_s14 = scalar_select %p26_p6, %s928_s17, %s28_s26  }
  0x42   : > { %p1093_p5 = por %p1284_p3, %p35_p13  ;;  %p37_p9 = por %p36_p10, %p35_p13 }
  0x43   : > { %s183_s20 = sand.u32 1, %s928_s17   ;;  %s648_s28 = sshll.u32 %s932_s18, 9 }
  0x44   : > { %s1285_s13 = scalar_select %p1093_p5, 1, 0 }
  0x45   : > { %s622_s24 = sshll.u32 %s183_s20, 5  ;;  %s1106_s27 = scalar_lea.hbm %s1272_s0, %s648_s28 }
  0x46   : > { %s187_s29 = scalar_lea.vmem [#allocation2], %s622_s24  ;;  %p1110_p11 = pnand %p726_p7, %p37_p9 }
  0x47   : > { %s194_s30 = sshll.u32 %s187_s29, 4  ;;  %s1114_s6 = scalar_lea.sflag [#allocation3], %s183_s20  ;;  %s1108_s30 = int_to_ptr.vmem [resolvable:$true] %s194_s30 }
  0x48   : > { %s832_s25 = scalar_lea.hbm %s1106_s27, 512  ;;  %p834_p0 = pneg %p1110_p11 }
  0x49   : > { %p833_p12 = scmp.ne.s32.totalorder %s1106_s27, %s832_s25  ;;  %s837_s26 = scalar_lea.hbm %s1272_s0, 1024 }
  0x4a   : > { %p838_p13 = scmp.lt.u32.totalorder %s1106_s27, %s1272_s0  ;;  %p839_p6 = scmp.lt.u32.totalorder %s837_s26, %s832_s25 }
  0x4b   : > { %p835_p2 = pnand %p834_p0, %p833_p12  ;;  %p841_p3 = scmp.lt.u32.totalorder %s832_s25, %s1106_s27 }
  0x4c   : > { %p840_p10 = por %p839_p6, %p838_p13 }
  0x4d   : > { %p836_p1 = pneg %p835_p2 }
  0x4e   : > { %p842_p7 = por %p841_p3, %p840_p10 }
  0x50   : > { %p843_p9 = pnand %p842_p7, %p836_p1 }
  0x52   : > { %846 = shalt.err (!%p843_p9)
}
  0x53   : > { %s847_s20 = scalar_lea.vmem %s1108_s30, 512  ;;  %s938_s28 = smov [#allocation2]  }
  0x54   : > { %p848_p12 = scmp.ne.s32.totalorder %s1108_s30, %s847_s20  ;;  %s852_s11 = sshll.u32 %s938_s28, 4  ;;  %s853_s11 = int_to_ptr.vmem [resolvable:$false] %s852_s11 }
  0x55   : > { %s854_s12 = scalar_lea.vmem %s853_s11, 1024  ;;  %p855_p4 = scmp.lt.s32.totalorder %s1108_s30, %s853_s11 }
  0x56   : > { %p850_p2 = pnand %p848_p12, %p834_p0  ;;  %p856_p13 = scmp.lt.s32.totalorder %s854_s12, %s847_s20 }
  0x58   : > { %p851_p5 = pneg %p850_p2  ;;  %p857_p6 = por %p856_p13, %p855_p4 }
  0x5a   : > { %p858_p10 = pnand %p857_p6, %p851_p5 }
  0x5c   : > { %861 = shalt.err (!%p858_p10)
}
  0x5d   : > { %s939_s29 = smov 64   ;;  %s940_s25 = smov 4  }
  0x5e   : > { %719 = dma.hbm_to_vmem [thread:$0]  (!%p1110_p11), %s1106_s27, 512, %s1108_s30, %s1114_s6, %s939_s29, %s939_s29, %s940_s25  }
  0x5f   : > { %206 = sbr.rel (%p1013_p8) target bundleno = 397 (0x18d), region = 36  ;;  %s1145_s7 = sand.u32 (!%p1013_p8), 1, %s924_s16  }
  0x60   : > { %s626_s8 = sshll.u32 (!%p1013_p8), %s1145_s7, 5  ;;  %s209_s26 = scalar_lea.sflag (!%p1013_p8), [#allocation3], %s1145_s7 }
  0x61   : > { %s1149_s10 = scalar_lea.vmem (!%p1013_p8), [#allocation2], %s626_s8  ;;  %p1287_p4 = scmp.ne.s32.totalorder (!%p1013_p8), %s1280_s21, 0 }
  0x66   : > { %907 = dma.done.wait (%p1287_p4), %s209_s26, 512  }
  0x67   : > { %909 = vsyncadd (%p1287_p4), %s209_s26, 4294966784  ;;  %p1288_p5 = scmp.eq.s32.totalorder %s994_s19, 0 }
  0x69   : > { %911 = dma.done.wait (%p1288_p5), [#allocation6], 512   ;;  %p1289_p8 = pmov %p1288_p5 }
  0x6a   : > { %v941_v0 = vmov 0.0|0.0   ;;  %vm942_vm0 = vmmov 0   ;;  %v943_v1 = vmov 0.0   ;;  %vm253_vm1 = vcmask 125952   ;;  %v1162_v2 = vld [vmem:[%s1149_s10] sm:$0xf] }
  0x6b   : > { %913 = vsyncadd (%p1289_p8), [#allocation6], 4294966784  ;;  %681 = vmatprep.subr.bf16.mxu0 %v941_v0  ;;  %689 = vmatprep.subr.bf16.mxu1 %v941_v0  ;;  %v1165_v3 = vld [vmem:[%s1149_s10 + $0x4] sm:$0xf]  ;;  %v1168_v4 = vld [vmem:[%s1149_s10 + $0x8] sm:$0xf]  ;;  %v271_v6 = vmul.f32 %v1162_v2, %v1162_v2 }
  0x6c   : > { %667 = vmatprep.mubr.msk.f32.mxu0 %vm942_vm0, %v943_v1  ;;  %678 = vmatprep.mubr.msk.f32.mxu1 %vm942_vm0, %v943_v1  ;;  %v1171_v5 = vld [vmem:[%s1149_s10 + $0xc] sm:$0xf]  ;;  %v254_v7 = vsel %vm253_vm1, %v1162_v2, 0.0  ;;  %v255_v8 = vsel %vm253_vm1, %v1165_v3, 0.0  ;;  %v272_v9 = vmul.f32 %v1165_v3, %v1165_v3  ;;  %v273_v10 = vmul.f32 %v1168_v4, %v1168_v4  ;;  %v249_v11 = vld [vmem:[%s1149_s10 + $0x10] sm:$0xf] }
  0x6d   : > { %v256_v12 = vadd.f32 %v255_v8, %v254_v7  ;;  %v257_v13 = vsel %vm253_vm1, %v1168_v4, 0.0  ;;  %v259_v14 = vsel %vm253_vm1, %v1171_v5, 0.0  ;;  %v274_v15 = vmul.f32 %v1171_v5, %v1171_v5  ;;  %v250_v16 = vld [vmem:[%s1149_s10 + $0x14] sm:$0xf]  ;;  %v251_v23 = vld [vmem:[%s1149_s10 + $0x18] sm:$0xf] }
  0x6e   : > { %v279_v18 = vsel %vm253_vm1, %v271_v6, 0.0  ;;  %v261_v19 = vsel %vm253_vm1, %v249_v11, 0.0  ;;  %v275_v20 = vmul.f32 %v249_v11, %v249_v11  ;;  %v280_v21 = vsel %vm253_vm1, %v272_v9, 0.0  ;;  %v252_v29 = vld [vmem:[%s1149_s10 + $0x1c] sm:$0xf]  ;;  %s629_s21 = sshll.u32 %s1145_s7, 4 }
  0x6f   : > { %v258_v17 = vadd.f32 %v257_v13, %v256_v12  ;;  %v282_v22 = vsel %vm253_vm1, %v273_v10, 0.0  ;;  %v281_v25 = vadd.f32 %v280_v21, %v279_v18  ;;  %v263_v26 = vsel %vm253_vm1, %v250_v16, 0.0  ;;  %s244_s30 = scalar_lea.vmem [#allocation8], %s629_s21  ;;  %s645_s20 = sshll.u32 %s994_s19, 7  ;;  %v419_v18 = vld [vmem:[#allocation7] sm:$0xff] }
  0x70   : > { %v276_v27 = vmul.f32 %v250_v16, %v250_v16  ;;  %v284_v28 = vsel %vm253_vm1, %v274_v15, 0.0  ;;  %v265_v32 = vsel %vm253_vm1, %v251_v23, 0.0  ;;  %v277_v33 = vmul.f32 %v251_v23, %v251_v23  ;;  %v424_v15 = vld [vmem:[#allocation5 + $0x8] sm:$0xff]  ;;  %s525_s5 = sshll.u32 %s244_s30, 4  ;;  %s1228_s19 = scalar_lea.hbm %s1276_s4, %s645_s20  ;;  %s1223_s5 = int_to_ptr.vmem [resolvable:$true] %s525_s5 }
  0x71   : > { %v260_v24 = vadd.f32 %v259_v14, %v258_v17  ;;  %v283_v31 = vadd.f32 %v282_v22, %v281_v25  ;;  %v286_v34 = vsel %vm253_vm1, %v275_v20, 0.0  ;;  %v267_v37 = vsel %vm253_vm1, %v252_v29, 0.0  ;;  %v316_v14 = vld [vmem:[#allocation5] sm:$0xff]  ;;  %v508_v20 = vld [vmem:[#allocation7 + $0x8] sm:$0xff]  ;;  %s513_s12 = scalar_lea.sflag [#allocation4], %s1145_s7  ;;  %s862_s29 = scalar_lea.vmem %s1223_s5, 256 }
  0x72   : > { %v278_v38 = vmul.f32 %v252_v29, %v252_v29  ;;  %v288_v39 = vsel %vm253_vm1, %v276_v27, 0.0  ;;  %v290_v42 = vsel %vm253_vm1, %v277_v33, 0.0  ;;  %vm329_vm2 = vcmask 130048   ;;  %p863_p11 = scmp.ne.s32.totalorder %s1223_s5, %s862_s29  ;;  %p1290_p0 = scmp.ne.s32.totalorder %s1285_s13, 0 }
  0x73   : > { %v262_v30 = vadd.f32 %v261_v19, %v260_v24  ;;  %v285_v36 = vadd.f32 %v284_v28, %v283_v31  ;;  %vm683_vm3 = vmpackc.low %vm329_vm2, %vm329_vm2  ;;  %vm421_vm4 = vcmask 261120   ;;  %s944_s25 = smov [#allocation8]  }
  0x74   : > { %v292_v45 = vsel %vm253_vm1, %v278_v38, 0.0  ;;  %p864_p1 = pnand %p863_p11, %p1290_p0  ;;  %s866_s8 = sshll.u32 %s944_s25, 4  ;;  %s867_s8 = int_to_ptr.vmem [resolvable:$false] %s866_s8 }
  0x75   : > { %v264_v35 = vadd.f32 %v263_v26, %v262_v30  ;;  %v287_v41 = vadd.f32 %v286_v34, %v285_v36  ;;  %s868_s26 = scalar_lea.vmem %s867_s8, 512  ;;  %p869_p7 = scmp.lt.s32.totalorder %s1223_s5, %s867_s8 }
  0x76   : > { %p865_p3 = pneg %p864_p1  ;;  %p870_p9 = scmp.lt.s32.totalorder %s868_s26, %s862_s29 }
  0x77   : > { %v266_v40 = vadd.f32 %v265_v32, %v264_v35  ;;  %v289_v44 = vadd.f32 %v288_v39, %v287_v41 }
  0x78   : > { %p871_p12 = por %p870_p9, %p869_p7 }
  0x79   : > { %v268_v43 = vadd.f32 %v267_v37, %v266_v40  ;;  %v291_v47 = vadd.f32 %v290_v42, %v289_v44 }
  0x7a   : > { %p872_p2 = pnand %p871_p12, %p865_p3 }
  0x7b   : > { %v270_v46 = vmul.f32 0.125, %v268_v43  ;;  %v293_v48 = vadd.f32 %v292_v45, %v291_v47 }
  0x7d   : > { %v295_v49 = vmul.f32 %v270_v46, %v270_v46  ;;  %v294_v50 = vmul.f32 0.125, %v293_v48  ;;  %v298_v54 = vsub.f32 %v1162_v2, %v270_v46  ;;  %v299_v55 = vsub.f32 %v1165_v3, %v270_v46 }
  0x7e   : > { %v300_v56 = vsub.f32 %v1168_v4, %v270_v46  ;;  %v301_v57 = vsub.f32 %v1171_v5, %v270_v46  ;;  %v302_v58 = vsub.f32 %v249_v11, %v270_v46  ;;  %v303_v59 = vsub.f32 %v250_v16, %v270_v46  ;;  %v635_v16 = vld [vmem:[%s1274_s2] ss:$0 sm:$0xff] }
  0x7f   : > { %v296_v51 = vsub.f32 %v294_v50, %v295_v49  ;;  %v304_v60 = vsub.f32 %v251_v23, %v270_v46  ;;  %v305_v61 = vsub.f32 %v252_v29, %v270_v46 }
  0x81   : > { %v297_v52 = vmax.f32 %v296_v51, 0.0 }
  0x83   : > { %v306_v53 = vadd.f32 1e-05, %v297_v52 }
  0x85   : > { %774 = vrsqrt.f32 %v306_v53 }
  0x8f   : > { %v775_v62 = vpop.eup %774 }
  0x90   : > { %v308_v63 = vmul.f32 %v775_v62, %v298_v54  ;;  %v309_v1 = vmul.f32 %v775_v62, %v299_v55  ;;  %v310_v6 = vmul.f32 %v775_v62, %v300_v56  ;;  %v311_v7 = vmul.f32 %v775_v62, %v301_v57 }
  0x91   : > { %v312_v8 = vmul.f32 %v775_v62, %v302_v58  ;;  %v313_v9 = vmul.f32 %v775_v62, %v303_v59  ;;  %v314_v12 = vmul.f32 %v775_v62, %v304_v60  ;;  %v315_v3 = vmul.f32 %v775_v62, %v305_v61 }
  0x92   : > { %v325_v10 = vcombine.low %v308_v63, %v309_v1  ;;  %v326_v2 = vcombine.low %v310_v6, %v311_v7 }
  0x93   : > { %v327_v5 = vcombine.low %v312_v8, %v313_v9  ;;  %v328_v11 = vcombine.low %v314_v12, %v315_v3 }
  0x94   : > { %v682_v4 = vpack.c.bf16 %v326_v2, %v325_v10 }
  0x95   : > { %v686_v13 = vpack.c.bf16 %v328_v11, %v327_v5 }
  0x96   : > { %684 = vmatpush3.bf16.xpose.msk.msra.mxu0 %vm683_vm3, %v682_v4  ;;  %692 = vmatpush3.bf16.xpose.msk.msra.mxu1 %vm683_vm3, %v682_v4 }
  0x97   : > { %685 = vmatprep.subr.bf16.mxu0 %v941_v0  ;;  %693 = vmatprep.subr.bf16.mxu1 %v941_v0  ;;  %v642_v0 = vld [vmem:[%s1274_s2 + $0x1] ss:$0 sm:$0xff] }
  0x9e   : > { %688 = vmatpush3.bf16.xpose.msk.msra.mxu0 %vm683_vm3, %v686_v13  ;;  %696 = vmatpush3.bf16.xpose.msk.msra.mxu1 %vm683_vm3, %v686_v13 }
  0xa5   : > { %668 = vmatmul.mubr.msk.f32.vlgmr.msra.gmra.mrb[0].mxu0 %vm329_vm2, %v316_v14  ;;  %679 = vmatmul.mubr.msk.f32.vlgmr.msra.gmra.mrb[0].mxu1 %vm329_vm2, %v424_v15 }
 0x178   : > { %v407_v17 = vpop.f32.mrb[0].mxu0  ;;  %v494_v19 = vpop.f32.mrb[0].mxu1 }
 0x179   : > { %v418_v21 = vmul.f32 %v635_v16, %v407_v17  ;;  %v506_v22 = vmul.f32 %v642_v0, %v494_v19  ;;  %v669_v23 = vpop.f32.mrb[1].mxu0  ;;  %v680_v24 = vpop.f32.mrb[1].mxu1 }
 0x17b   : > { %v420_v25 = vadd.f32 %v419_v18, %v418_v21  ;;  %v509_v26 = vadd.f32 %v508_v20, %v506_v22 }
 0x17d   : > { %422 = vst.msk [vmem:[%s244_s30] sm:$0xff] %vm421_vm4, %v420_v25  ;;  %643 = vst.msk [vmem:[%s244_s30 + $0x8] sm:$0xff] %vm421_vm4, %v509_v26 }
 0x17e   : > { %875 = shalt.err (!%p872_p2)
}
 0x17f   : > { %s876_s10 = scalar_lea.hbm %s1228_s19, 256  ;;  %s880_s27 = scalar_lea.hbm %s1276_s4, 512 }
 0x180   : > { %p877_p13 = scmp.ne.s32.totalorder %s1228_s19, %s876_s10  ;;  %p881_p4 = scmp.lt.u32.totalorder %s1228_s19, %s1276_s4 }
 0x181   : > { %p882_p5 = scmp.lt.u32.totalorder %s880_s27, %s876_s10  ;;  %p884_p11 = scmp.lt.u32.totalorder %s876_s10, %s1228_s19 }
 0x182   : > { %p878_p6 = pnand %p877_p13, %p1290_p0 }
 0x183   : > { %p883_p8 = por %p882_p5, %p881_p4 }
 0x184   : > { %p879_p10 = pneg %p878_p6 }
 0x185   : > { %p885_p1 = por %p884_p11, %p883_p8 }
 0x187   : > { %p886_p3 = pnand %p885_p1, %p879_p10 }
 0x189   : > { %889 = shalt.err (!%p886_p3)
}
 0x18a   : > { %s945_s24 = smov 128   ;;  %s946_s20 = smov 256  }
 0x18b   : > { %s947_s28 = smov 8  }
 0x18c   : > { %707 = dma.vmem_to_hbm [thread:$0]  (%p1290_p0), %s1223_s5, 256, %s1228_s19, %s513_s12, %s945_s24, %s946_s20, %s947_s28  }
 0x18d PF: > { %s540_s11 = sand.u32 1, %s920_s15   ;;  %p1291_p7 = scmp.ne.s32.totalorder %s1281_s22, 0 }
 0x18e   : > { %p1292_p9 = scmp.ge.s32.totalorder %s932_s18, 2  ;;  %s541_s29 = scalar_lea.sflag [#allocation4], %s540_s11 }
 0x190   : > { %p721_p12 = pnand %p1292_p9, %p1291_p7 }
 0x192   : > { %915 = dma.done.wait (!%p721_p12), %s541_s29, 256  }
 0x193   : > { %917 = vsyncadd (!%p721_p12), %s541_s29, 4294967040  ;;  %p18_p2 = scmp.ge.s32.totalorder %s1083_s9, 4   ;;  %s1293_s15 = smov %s924_s16 }
 0x194   : > { %s1294_s16 = smov %s928_s17  ;;  %s1295_s17 = smov %s1099_s14 }
 0x195   : > { %s1296_s18 = smov %s1083_s9  ;;  %20 = sbr.rel (!%p18_p2) target bundleno = 6 (0x6), region = 93 }
 0x19c   :  { %546 = vsyncpa [#allocation3], 1 }
 0x19d   :  { %548 = vsyncpa [#allocation3 + $0x1], 1 }
 0x19e   :  { %549 = vsyncpa [#allocation6], 1 }
 0x19f   :  { %550 = vsyncpa [#allocation4], 1 }
 0x1a0   :  { %552 = vsyncpa [#allocation4 + $0x1], 1 }

</bundles_post_ra>
